<compile_context>
chip_gen: v6e
topology: v6e:2x2x1
jax: 0.10.0
libtpu: 0.0.40
codegen_flags: <defaults>
</compile_context>

<pallas_src>
import numpy as np
import jax
import jax.numpy as jnp
from jax.experimental import pallas as pl
from jax.experimental.pallas import tpu as pltpu

BN_EPS = 1e-5


def _round_up(x: int, m: int) -> int:
    return -(-x // m) * m


# ----------------------------------------------------------------------------
# Exact pooling / interpolation matrices (host-side, static per (H, W, bin)).
# ----------------------------------------------------------------------------
def _adaptive_pool_membership(in_size: int, out_size: int) -> np.ndarray:
    """0/1 window membership (AdaptiveAvgPool2d floor/ceil rule); exact in bf16."""
    m = np.zeros((out_size, in_size), dtype=np.float32)
    for i in range(out_size):
        start = (i * in_size) // out_size
        end = -((-(i + 1) * in_size) // out_size)  # ceil((i+1)*in/out)
        m[i, start:end] = 1.0
    return m


def _bilinear_matrix(out_size: int, in_size: int) -> np.ndarray:
    """Rows = output pixels; bilinear, align_corners=True (PyTorch)."""
    m = np.zeros((out_size, in_size), dtype=np.float32)
    if in_size == 1:
        m[:, 0] = 1.0
        return m
    scale = (in_size - 1) / (out_size - 1)
    for h in range(out_size):
        src = h * scale
        i0 = min(int(np.floor(src)), in_size - 1)
        i1 = min(i0 + 1, in_size - 1)
        w1 = src - i0
        m[h, i0] += 1.0 - w1
        m[h, i1] += w1
    return m


# ----------------------------------------------------------------------------
# VMEM-aware tiling.
# ----------------------------------------------------------------------------
def _vmem_limit_bytes() -> int:
    cap = 64 * 1024 * 1024
    try:
        info = pltpu.get_tpu_info()
        cap = int(getattr(info, "vmem_capacity_bytes", cap))
    except Exception:
        pass
    return int(cap * 3 // 4)


def _choose_s_tile(s, c, c_total, r, nb, p_total, vmem_limit, max_tile=1024):
    """Largest multiple-of-128 spatial tile whose double-buffered pipelines fit
    the VMEM budget; prefers tiles that minimize zero-padding of S."""
    s128 = _round_up(s, 128)
    p_pad = _round_up(p_total, 128)
    # Bytes not proportional to s_tile (resident matrices, weights, accumulator).
    resident = max(
        2 * p_total * s128 * 4 + 2 * nb * r * (p_total + 2) * 4,     # kernel 2
        2 * s128 * p_pad * 2 + 2 * nb * r * c * 2 + c * p_pad * 4,   # kernel 1
    )
    margin = 4 * 1024 * 1024
    lane_bytes = 2 * 4 * (c + c_total)          # double-buffered f32 in + out (kernel 2)
    avail = vmem_limit - resident - margin
    cap = avail // lane_bytes if avail > 0 else 0
    cap = int(min(max_tile, s128, max(128, (cap // 128) * 128)))
    best, best_pad = 128, s128
    for t in range(128, cap + 1, 128):
        pad = _round_up(s, t)
        if pad <= best_pad:                      # prefer larger tile on ties
            best, best_pad = t, pad
    return best, best_pad


# ----------------------------------------------------------------------------
# Kernel 1: fused adaptive avg-pool (all bins, one MXU push per tile) + 1x1 conv.
# Grid = (N, n_spatial_tiles), semantics ("parallel", "arbitrary").
# ----------------------------------------------------------------------------
def _make_pool_conv_kernel(nb, psz, p_off, s_tile):
    def kernel(*refs):
        x_ref = refs[0]               # (C, s_tile)        f32
        pm_ref = refs[1]              # (S_pad, P_pad)     bf16 0/1, resident
        w_ref = refs[2]               # (NB, R, C)         bf16, resident
        inv_ref = refs[3]             # (1, P_pad)         f32 (1/window area)
        y_refs = refs[4:4 + nb]       # (R, p_b)           f32 outputs
        acc_ref = refs[4 + nb]        # (C, P_pad)         f32 scratch

        si = pl.program_id(1)

        @pl.when(si == 0)
        def _init():
            acc_ref[...] = jnp.zeros(acc_ref.shape, jnp.float32)

        # ONE lane-dense bf16 MXU matmul per spatial tile (all bins fused).
        start = pl.multiple_of(si * s_tile, s_tile)
        acc_ref[...] += jnp.dot(x_ref[...].astype(jnp.bfloat16),
                                pm_ref[pl.ds(start, s_tile), :],
                                preferred_element_type=jnp.float32)

        @pl.when(si == pl.num_programs(1) - 1)
        def _finalize():
            accb = acc_ref[...].astype(jnp.bfloat16)   # tiny (C, 128) cast
            inv = inv_ref[...]
            for b in range(nb):
                o, p = p_off[b], psz[b]
                y = jnp.dot(w_ref[b], accb[:, o:o + p],
                            preferred_element_type=jnp.float32)
                y_refs[b][...] = y * inv[:, o:o + p]   # area norm in f32

    return kernel


# ----------------------------------------------------------------------------
# Kernel 2: BN affine + ReLU + bilinear upsample + x passthrough, written with
# direct sliced, lane-dense stores into the concatenated (C_total, s_tile) tile.
# Grid = (N, n_spatial_tiles), semantics ("parallel", "parallel").
# ----------------------------------------------------------------------------
def _make_upsample_kernel(nb, psz, c, r, s_tile):
    um_index, ui = {}, 0
    for b in range(nb):
        if psz[b] > 1:
            um_index[b] = ui
            ui += 1
    n_um = ui

    def kernel(*refs):
        x_ref = refs[0]                        # (C, s_tile)        f32
        y_refs = refs[1:1 + nb]                # (R, p_b)           f32
        scale_ref = refs[1 + nb]               # (NB, R, 1)         f32
        bias_ref = refs[2 + nb]                # (NB, R, 1)         f32
        um_refs = refs[3 + nb:3 + nb + n_um]   # (p_b, S_pad)       f32, resident
        o_ref = refs[3 + nb + n_um]            # (C_total, s_tile)  f32

        si = pl.program_id(1)
        start = pl.multiple_of(si * s_tile, s_tile)

        # Passthrough channels: direct sliced store (no concat temp).
        o_ref[:c, :] = x_ref[...]
        for b in range(nb):
            # Fused BN affine + ReLU epilogue in f32.
            yb = jnp.maximum(y_refs[b][...] * scale_ref[b] + bias_ref[b], 0.0)
            row0 = c + b * r
            if psz[b] == 1:
                # bin=1: bilinear matrix is all-ones -> lane broadcast, no MXU.
                o_ref[row0:row0 + r, :] = jnp.broadcast_to(yb, (r, s_tile))
            else:
                um = um_refs[um_index[b]][:, pl.ds(start, s_tile)]
                o_ref[row0:row0 + r, :] = jnp.dot(
                    yb, um, preferred_element_type=jnp.float32)

    return kernel


# ----------------------------------------------------------------------------
# PPM module (parameter container + forward wrapper).
# ----------------------------------------------------------------------------
class PPM:
    def __init__(self, in_dim, reduction_dim, bins, key):
        self.in_dim = in_dim
        self.reduction_dim = reduction_dim
        self.bins = tuple(bins)
        nb = len(self.bins)
        ws = []
        for _ in self.bins:
            key, sub = jax.random.split(key)
            ws.append(jax.random.normal(sub, (reduction_dim, in_dim), jnp.float32) * 0.1)
        self.w = jnp.stack(ws).astype(jnp.bfloat16)               # (NB, R, C)
        self.gamma = jnp.ones((nb, reduction_dim), jnp.float32)   # BN defaults
        self.beta = jnp.zeros((nb, reduction_dim), jnp.float32)
        self._mat_cache = {}
        # TODO(synk): training-mode BatchNorm running-stat (momentum) updates are a
        # stateful side effect that does not change the forward output; not modeled.
        # TODO(synk): for N==1 on v7x, the spatial reduction of kernel 1 could be
        # split across the two TensorCores (partial sums folded into the BN-stats
        # reduction) to avoid idling one core; not implemented.

    def _matrices(self, h, w, s_pad):
        key = (h, w, s_pad)
        if key not in self._mat_cache:
            s = h * w
            psz = [b * b for b in self.bins]
            p_total = sum(psz)
            p_pad = _round_up(p_total, 128)
            pm = np.zeros((s_pad, p_pad), np.float32)
            inv = np.ones((1, p_pad), np.float32)
            off = 0
            for b in self.bins:
                memb = np.kron(_adaptive_pool_membership(h, b),
                               _adaptive_pool_membership(w, b))     # (p_b, S) 0/1
                pm[:s, off:off + memb.shape[0]] = memb.T
                inv[0, off:off + memb.shape[0]] = 1.0 / memb.sum(axis=1)
                off += memb.shape[0]
            ums = []
            for b in self.bins:
                um = np.kron(_bilinear_matrix(h, b),
                             _bilinear_matrix(w, b)).T               # (p_b, S)
                um_p = np.zeros((um.shape[0], s_pad), np.float32)
                um_p[:, :s] = um
                ums.append(jnp.asarray(um_p, jnp.float32))
            self._mat_cache[key] = (jnp.asarray(pm, jnp.bfloat16),
                                    jnp.asarray(inv, jnp.float32),
                                    tuple(ums))
        return self._mat_cache[key]

    def __call__(self, x, s_tile=None):
        n, c, h, wdt = x.shape
        assert c == self.in_dim
        r = self.reduction_dim
        nb = len(self.bins)
        s = h * wdt
        psz = [b * b for b in self.bins]
        p_total = sum(psz)
        p_off = np.cumsum([0] + psz[:-1]).tolist()
        p_pad = _round_up(p_total, 128)
        c_total = c + nb * r

        vmem_limit = _vmem_limit_bytes()
        if s_tile is None:
            s_tile, s_pad = _choose_s_tile(s, c, c_total, r, nb, p_total, vmem_limit)
        else:
            s_tile = max(128, (int(s_tile) // 128) * 128)
            s_pad = _round_up(s, s_tile)
        n_s = s_pad // s_tile

        x3 = x.reshape(n, c, s).astype(jnp.float32)
        if s_pad != s:
            x3 = jnp.pad(x3, ((0, 0), (0, 0), (0, s_pad - s)))
        pm, inv_area, ums = self._matrices(h, wdt, s_pad)

        # ---- kernel 1: fused adaptive avg-pool (all bins) + per-bin 1x1 conv ----
        pool_cost = pl.CostEstimate(
            flops=int(2 * n * c * s_pad * p_pad + 2 * n * r * c * p_total),
            transcendentals=0,
            bytes_accessed=int(4 * n * c * s_pad + 2 * s_pad * p_pad
                               + 2 * nb * r * c + 4 * n * r * p_total))
        in_specs = [
            pl.BlockSpec((None, c, s_tile), lambda ni, si: (ni, 0, si)),  # x tile
            pl.BlockSpec((s_pad, p_pad), lambda ni, si: (0, 0)),          # pool matrix (resident)
            pl.BlockSpec((nb, r, c), lambda ni, si: (0, 0, 0)),           # conv weights (resident)
            pl.BlockSpec((1, p_pad), lambda ni, si: (0, 0)),              # 1/window area (resident)
        ]
        ys = pl.pallas_call(
            _make_pool_conv_kernel(nb, psz, p_off, s_tile),
            out_shape=tuple(jax.ShapeDtypeStruct((n, r, p), jnp.float32) for p in psz),
            grid=(n, n_s),
            in_specs=in_specs,
            out_specs=tuple(pl.BlockSpec((None, r, p), lambda ni, si: (ni, 0, 0))
                            for p in psz),
            scratch_shapes=[pltpu.VMEM((c, p_pad), jnp.float32)],
            compiler_params=pltpu.CompilerParams(
                dimension_semantics=("parallel", "arbitrary"),
                vmem_limit_bytes=vmem_limit),
            cost_estimate=pool_cost,
        )(x3, pm, self.w, inv_area)

        # ---- BatchNorm batch statistics (train mode, couples all samples) ----
        # Tiny (N*R*bin^2) tensors; fold with plain XLA ops between the kernels.
        scales, biases = [], []
        for b in range(nb):
            yb = ys[b]                                        # (N, R, p_b) f32
            mean = jnp.mean(yb, axis=(0, 2))
            var = jnp.mean(jnp.square(yb - mean[None, :, None]), axis=(0, 2))
            sc = self.gamma[b] * jax.lax.rsqrt(var + BN_EPS)
            scales.append(sc)
            biases.append(self.beta[b] - mean * sc)
        scale = jnp.stack(scales)[:, :, None]                 # (NB, R, 1)
        bias = jnp.stack(biases)[:, :, None]                  # (NB, R, 1)

        # ---- kernel 2: BN affine + ReLU + bilinear upsample + passthrough ----
        ums_k = tuple(ums[b] for b in range(nb) if psz[b] > 1)
        up_cost = pl.CostEstimate(
            flops=int(2 * n * r * p_total * s_pad),
            transcendentals=0,
            bytes_accessed=int(4 * n * c * s_pad + 4 * n * r * p_total
                               + 4 * p_total * s_pad + 4 * n * c_total * s_pad))
        in_specs = [pl.BlockSpec((None, c, s_tile), lambda ni, si: (ni, 0, si))]
        in_specs += [pl.BlockSpec((None, r, p), lambda ni, si: (ni, 0, 0)) for p in psz]
        in_specs += [pl.BlockSpec((nb, r, 1), lambda ni, si: (0, 0, 0))] * 2
        in_specs += [pl.BlockSpec((p, s_pad), lambda ni, si: (0, 0))
                     for p in psz if p > 1]                   # upsample mats (resident)
        out3 = pl.pallas_call(
            _make_upsample_kernel(nb, psz, c, r, s_tile),
            out_shape=jax.ShapeDtypeStruct((n, c_total, s_pad), jnp.float32),
            grid=(n, n_s),
            in_specs=in_specs,
            out_specs=pl.BlockSpec((None, c_total, s_tile), lambda ni, si: (ni, 0, si)),
            compiler_params=pltpu.CompilerParams(
                dimension_semantics=("parallel", "parallel"),
                vmem_limit_bytes=vmem_limit),
            cost_estimate=up_cost,
        )(x3, *ys, scale, bias, *ums_k)

        if s_pad != s:
            out3 = out3[:, :, :s]
        return out3.reshape(n, c_total, h, wdt)

    # Pure-JAX reference mirroring the kernel's precision choices (bf16 pooling /
    # conv with f32 accumulation, f32 area norm, f32 BN/ReLU/upsample).
    def reference(self, x):
        n, c, h, wdt = x.shape
        s = h * wdt
        r = self.reduction_dim
        x3 = x.reshape(n, c, s).astype(jnp.float32)
        xb = x3.astype(jnp.bfloat16)
        outs = [x]
        for idx, b in enumerate(self.bins):
            memb = np.kron(_adaptive_pool_membership(h, b),
                           _adaptive_pool_membership(wdt, b))        # (p, s) 0/1
            inv = (1.0 / memb.sum(axis=1)).astype(np.float32)        # (p,)
            um = np.kron(_bilinear_matrix(h, b), _bilinear_matrix(wdt, b))  # (s, p)
            pooled = jnp.einsum("ncs,ps->ncp", xb,
                                jnp.asarray(memb, jnp.bfloat16),
                                preferred_element_type=jnp.float32)
            y = jnp.einsum("rc,ncp->nrp", self.w[idx],
                           pooled.astype(jnp.bfloat16),
                           preferred_element_type=jnp.float32)
            y = y * jnp.asarray(inv)[None, None, :]
            mean = jnp.mean(y, axis=(0, 2))
            var = jnp.mean(jnp.square(y - mean[None, :, None]), axis=(0, 2))
            sc = self.gamma[idx] * jax.lax.rsqrt(var + BN_EPS)
            bi = self.beta[idx] - mean * sc
            yr = jnp.maximum(y * sc[None, :, None] + bi[None, :, None], 0.0)
            o = jnp.einsum("nrp,sp->nrs", yr, jnp.asarray(um, jnp.float32),
                           preferred_element_type=jnp.float32,
                           precision=jax.lax.Precision.HIGHEST)
            outs.append(o.reshape(n, r, h, wdt))
        return jnp.concatenate(outs, axis=1)


if __name__ == "__main__":
    key = jax.random.PRNGKey(0)
    key, xkey, pkey, xkey2 = jax.random.split(key, 4)

    # Small but sublane-friendly shapes (C and R multiples of 8, like the real
    # PSPNet where C=2048, R=512).
    N, C, H, W = 2, 8, 16, 16
    bins = (1, 2, 3, 6)          # classic PSPNet pyramid scales
    reduction_dim = 8

    x = jax.random.normal(xkey, (N, C, H, W), jnp.float32)
    ppm = PPM(C, reduction_dim, bins, pkey)

    # s_tile=128 forces the multi-tile (accumulating, pipelined) path even at
    # this small demo size; production sizes use the VMEM-aware default.
    out = jax.block_until_ready(ppm(x, s_tile=128))

    expected_channels = C + reduction_dim * len(bins)
    assert out.shape == (N, expected_channels, H, W), out.shape
    assert bool(jnp.all(jnp.isfinite(out)))

    ref = jax.block_until_ready(ppm.reference(x))
    max_err = float(jnp.max(jnp.abs(out - ref)))
    # bf16 pooling/conv pipeline (mirrored in the reference): allow a few e-3.
    assert bool(jnp.allclose(out, ref, rtol=2e-3, atol=5e-3)), max_err
    # passthrough channels must be bit-exact copies of x
    assert bool(jnp.array_equal(out[:, :C], x))

    # Exercise the zero-padding path (spatial extent not a multiple of 128).
    x2 = jax.random.normal(xkey2, (1, C, 6, 6), jnp.float32)
    out2 = jax.block_until_ready(ppm(x2))
    ref2 = jax.block_until_ready(ppm.reference(x2))
    assert out2.shape == (1, expected_channels, 6, 6), out2.shape
    assert bool(jnp.allclose(out2, ref2, rtol=2e-3, atol=5e-3))
    assert bool(jnp.array_equal(out2[:, :C], x2))

    print("KERNEL_OK")
</pallas_src>

<mosaic_0001>
module attributes {stable_mosaic.version = 11 : i64} {
  func.func @kernel(%arg0: i32, %arg1: i32, %arg2: memref<1x8x128xf32, #tpu.memory_space<vmem>>, %arg3: memref<256x128xbf16, #tpu.memory_space<vmem>>, %arg4: memref<4x8x8xbf16, #tpu.memory_space<vmem>>, %arg5: memref<1x128xf32, #tpu.memory_space<vmem>>, %arg6: memref<1x8x1xf32, #tpu.memory_space<vmem>>, %arg7: memref<1x8x4xf32, #tpu.memory_space<vmem>>, %arg8: memref<1x8x9xf32, #tpu.memory_space<vmem>>, %arg9: memref<1x8x36xf32, #tpu.memory_space<vmem>>, %arg10: memref<8x128xf32, #tpu.memory_space<vmem>>) attributes {dimension_semantics = [#tpu.dimension_semantics<parallel>, #tpu.dimension_semantics<arbitrary>], iteration_bounds = array<i64: 2, 2>, scalar_prefetch = 0 : i64, scratch_operands = 1 : i64, tpu.core_type = #tpu.core_type<tc>, window_params = [{transform_indices = @transform_0, window_bounds = array<i64: 1, 8, 128>}, {pipeline_mode = #tpu.pipeline_mode<synchronous>, transform_indices = @transform_1, window_bounds = array<i64: 256, 128>}, {pipeline_mode = #tpu.pipeline_mode<synchronous>, transform_indices = @transform_2, window_bounds = array<i64: 4, 8, 8>}, {pipeline_mode = #tpu.pipeline_mode<synchronous>, transform_indices = @transform_3, window_bounds = array<i64: 1, 128>}, {transform_indices = @transform_4, window_bounds = array<i64: 1, 8, 1>}, {transform_indices = @transform_5, window_bounds = array<i64: 1, 8, 4>}, {transform_indices = @transform_6, window_bounds = array<i64: 1, 8, 9>}, {transform_indices = @transform_7, window_bounds = array<i64: 1, 8, 36>}]} {
    %c0_i32 = arith.constant 0 : i32
    %0 = arith.cmpi eq, %arg1, %c0_i32 : i32
    %1 = arith.extui %0 : i1 to i32
    %c0_i32_0 = arith.constant 0 : i32
    %2 = arith.cmpi ne, %1, %c0_i32_0 : i32
    scf.if %2 {
      %cst_9 = arith.constant 0.000000e+00 : f32
      %17 = vector.broadcast %cst_9 : f32 to vector<8x128xf32>
      %c0_10 = arith.constant 0 : index
      %c0_11 = arith.constant 0 : index
      %18 = vector.load %arg10[%c0_10, %c0_11] : memref<8x128xf32, #tpu.memory_space<vmem>>, vector<8x128xf32>
      tpu.vector_store %arg10[%c0_10, %c0_11], %17 {strides = array<i32>} : memref<8x128xf32, #tpu.memory_space<vmem>>, vector<8x128xf32>,
    } else {
    }
    %c128_i32 = arith.constant 128 : i32
    %3 = arith.muli %arg1, %c128_i32 : i32
    %4 = tpu.assume_multiple %3, 128 : i32
    %c0 = arith.constant 0 : index
    %c0_1 = arith.constant 0 : index
    %5 = vector.load %arg10[%c0, %c0_1] : memref<8x128xf32, #tpu.memory_space<vmem>>, vector<8x128xf32>
    %c0_2 = arith.constant 0 : index
    %c0_3 = arith.constant 0 : index
    %c0_4 = arith.constant 0 : index
    %6 = vector.load %arg2[%c0_2, %c0_3, %c0_4] : memref<1x8x128xf32, #tpu.memory_space<vmem>>, vector<1x8x128xf32>
    %7 = vector.shape_cast %6 : vector<1x8x128xf32> to vector<8x128xf32>
    %8 = arith.truncf %7 : vector<8x128xf32> to vector<8x128xbf16>
    %9 = arith.index_cast %4 : i32 to index
    %c0_5 = arith.constant 0 : index
    %10 = vector.load %arg3[%9, %c0_5] : memref<256x128xbf16, #tpu.memory_space<vmem>>, vector<128x128xbf16>
    %cst = arith.constant dense<0.000000e+00> : vector<8x128xf32>
    %11 = tpu.matmul %8, %10, %cst {dimension_numbers = #tpu.dot_dimension_numbers<[1], [0], [0], [1], [0, 0, 1, 1], [], []>} : vector<8x128xbf16>, vector<128x128xbf16>, vector<8x128xf32> -> vector<8x128xf32>
    %12 = arith.addf %5, %11 : vector<8x128xf32>
    %c0_6 = arith.constant 0 : index
    %c0_7 = arith.constant 0 : index
    %13 = vector.load %arg10[%c0_6, %c0_7] : memref<8x128xf32, #tpu.memory_space<vmem>>, vector<8x128xf32>
    tpu.vector_store %arg10[%c0_6, %c0_7], %12 {strides = array<i32>} : memref<8x128xf32, #tpu.memory_space<vmem>>, vector<8x128xf32>,
    %c1_i32 = arith.constant 1 : i32
    %14 = arith.cmpi eq, %arg1, %c1_i32 : i32
    %15 = arith.extui %14 : i1 to i32
    %c0_i32_8 = arith.constant 0 : i32
    %16 = arith.cmpi ne, %15, %c0_i32_8 : i32
    scf.if %16 {
      %c0_9 = arith.constant 0 : index
      %c0_10 = arith.constant 0 : index
      %17 = vector.load %arg10[%c0_9, %c0_10] : memref<8x128xf32, #tpu.memory_space<vmem>>, vector<8x128xf32>
      %18 = arith.truncf %17 : vector<8x128xf32> to vector<8x128xbf16>
      %c0_11 = arith.constant 0 : index
      %c0_12 = arith.constant 0 : index
      %19 = vector.load %arg5[%c0_11, %c0_12] : memref<1x128xf32, #tpu.memory_space<vmem>>, vector<1x128xf32>
      %c0_13 = arith.constant 0 : index
      %c0_14 = arith.constant 0 : index
      %c0_15 = arith.constant 0 : index
      %20 = vector.load %arg4[%c0_13, %c0_14, %c0_15] : memref<4x8x8xbf16, #tpu.memory_space<vmem>>, vector<1x8x8xbf16>
      %21 = vector.shape_cast %20 : vector<1x8x8xbf16> to vector<8x8xbf16>
      %22 = vector.extract_strided_slice %18 {offsets = [0, 0], sizes = [8, 1], strides = [1, 1]} : vector<8x128xbf16> to vector<8x1xbf16>
      %cst_16 = arith.constant dense<0.000000e+00> : vector<8x1xf32>
      %23 = tpu.matmul %21, %22, %cst_16 {dimension_numbers = #tpu.dot_dimension_numbers<[1], [0], [0], [1], [0, 0, 1, 1], [], []>} : vector<8x8xbf16>, vector<8x1xbf16>, vector<8x1xf32> -> vector<8x1xf32>
      %24 = vector.extract_strided_slice %19 {offsets = [0, 0], sizes = [1, 1], strides = [1, 1]} : vector<1x128xf32> to vector<1x1xf32>
      %25 = vector.broadcast %24 : vector<1x1xf32> to vector<8x1xf32>
      %26 = arith.mulf %23, %25 : vector<8x1xf32>
      %c0_17 = arith.constant 0 : index
      %c0_18 = arith.constant 0 : index
      %c0_19 = arith.constant 0 : index
      %27 = vector.load %arg6[%c0_17, %c0_18, %c0_19] : memref<1x8x1xf32, #tpu.memory_space<vmem>>, vector<1x8x1xf32>
      %28 = vector.shape_cast %27 : vector<1x8x1xf32> to vector<8x1xf32>
      %29 = vector.shape_cast %26 : vector<8x1xf32> to vector<1x8x1xf32>
      tpu.vector_store %arg6[%c0_17, %c0_18, %c0_19], %29 {strides = array<i32>} : memref<1x8x1xf32, #tpu.memory_space<vmem>>, vector<1x8x1xf32>,
      %c1 = arith.constant 1 : index
      %c0_20 = arith.constant 0 : index
      %c0_21 = arith.constant 0 : index
      %30 = vector.load %arg4[%c1, %c0_20, %c0_21] : memref<4x8x8xbf16, #tpu.memory_space<vmem>>, vector<1x8x8xbf16>
      %31 = vector.shape_cast %30 : vector<1x8x8xbf16> to vector<8x8xbf16>
      %32 = vector.extract_strided_slice %18 {offsets = [0, 1], sizes = [8, 4], strides = [1, 1]} : vector<8x128xbf16> to vector<8x4xbf16>
      %cst_22 = arith.constant dense<0.000000e+00> : vector<8x4xf32>
      %33 = tpu.matmul %31, %32, %cst_22 {dimension_numbers = #tpu.dot_dimension_numbers<[1], [0], [0], [1], [0, 0, 1, 1], [], []>} : vector<8x8xbf16>, vector<8x4xbf16>, vector<8x4xf32> -> vector<8x4xf32>
      %34 = vector.extract_strided_slice %19 {offsets = [0, 1], sizes = [1, 4], strides = [1, 1]} : vector<1x128xf32> to vector<1x4xf32>
      %35 = vector.broadcast %34 : vector<1x4xf32> to vector<8x4xf32>
      %36 = arith.mulf %33, %35 : vector<8x4xf32>
      %c0_23 = arith.constant 0 : index
      %c0_24 = arith.constant 0 : index
      %c0_25 = arith.constant 0 : index
      %37 = vector.load %arg7[%c0_23, %c0_24, %c0_25] : memref<1x8x4xf32, #tpu.memory_space<vmem>>, vector<1x8x4xf32>
      %38 = vector.shape_cast %37 : vector<1x8x4xf32> to vector<8x4xf32>
      %39 = vector.shape_cast %36 : vector<8x4xf32> to vector<1x8x4xf32>
      tpu.vector_store %arg7[%c0_23, %c0_24, %c0_25], %39 {strides = array<i32>} : memref<1x8x4xf32, #tpu.memory_space<vmem>>, vector<1x8x4xf32>,
      %c2 = arith.constant 2 : index
      %c0_26 = arith.constant 0 : index
      %c0_27 = arith.constant 0 : index
      %40 = vector.load %arg4[%c2, %c0_26, %c0_27] : memref<4x8x8xbf16, #tpu.memory_space<vmem>>, vector<1x8x8xbf16>
      %41 = vector.shape_cast %40 : vector<1x8x8xbf16> to vector<8x8xbf16>
      %42 = vector.extract_strided_slice %18 {offsets = [0, 5], sizes = [8, 9], strides = [1, 1]} : vector<8x128xbf16> to vector<8x9xbf16>
      %cst_28 = arith.constant dense<0.000000e+00> : vector<8x9xf32>
      %43 = tpu.matmul %41, %42, %cst_28 {dimension_numbers = #tpu.dot_dimension_numbers<[1], [0], [0], [1], [0, 0, 1, 1], [], []>} : vector<8x8xbf16>, vector<8x9xbf16>, vector<8x9xf32> -> vector<8x9xf32>
      %44 = vector.extract_strided_slice %19 {offsets = [0, 5], sizes = [1, 9], strides = [1, 1]} : vector<1x128xf32> to vector<1x9xf32>
      %45 = vector.broadcast %44 : vector<1x9xf32> to vector<8x9xf32>
      %46 = arith.mulf %43, %45 : vector<8x9xf32>
      %c0_29 = arith.constant 0 : index
      %c0_30 = arith.constant 0 : index
      %c0_31 = arith.constant 0 : index
      %47 = vector.load %arg8[%c0_29, %c0_30, %c0_31] : memref<1x8x9xf32, #tpu.memory_space<vmem>>, vector<1x8x9xf32>
      %48 = vector.shape_cast %47 : vector<1x8x9xf32> to vector<8x9xf32>
      %49 = vector.shape_cast %46 : vector<8x9xf32> to vector<1x8x9xf32>
      tpu.vector_store %arg8[%c0_29, %c0_30, %c0_31], %49 {strides = array<i32>} : memref<1x8x9xf32, #tpu.memory_space<vmem>>, vector<1x8x9xf32>,
      %c3 = arith.constant 3 : index
      %c0_32 = arith.constant 0 : index
      %c0_33 = arith.constant 0 : index
      %50 = vector.load %arg4[%c3, %c0_32, %c0_33] : memref<4x8x8xbf16, #tpu.memory_space<vmem>>, vector<1x8x8xbf16>
      %51 = vector.shape_cast %50 : vector<1x8x8xbf16> to vector<8x8xbf16>
      %52 = vector.extract_strided_slice %18 {offsets = [0, 14], sizes = [8, 36], strides = [1, 1]} : vector<8x128xbf16> to vector<8x36xbf16>
      %cst_34 = arith.constant dense<0.000000e+00> : vector<8x36xf32>
      %53 = tpu.matmul %51, %52, %cst_34 {dimension_numbers = #tpu.dot_dimension_numbers<[1], [0], [0], [1], [0, 0, 1, 1], [], []>} : vector<8x8xbf16>, vector<8x36xbf16>, vector<8x36xf32> -> vector<8x36xf32>
      %54 = vector.extract_strided_slice %19 {offsets = [0, 14], sizes = [1, 36], strides = [1, 1]} : vector<1x128xf32> to vector<1x36xf32>
      %55 = vector.broadcast %54 : vector<1x36xf32> to vector<8x36xf32>
      %56 = arith.mulf %53, %55 : vector<8x36xf32>
      %c0_35 = arith.constant 0 : index
      %c0_36 = arith.constant 0 : index
      %c0_37 = arith.constant 0 : index
      %57 = vector.load %arg9[%c0_35, %c0_36, %c0_37] : memref<1x8x36xf32, #tpu.memory_space<vmem>>, vector<1x8x36xf32>
      %58 = vector.shape_cast %57 : vector<1x8x36xf32> to vector<8x36xf32>
      %59 = vector.shape_cast %56 : vector<8x36xf32> to vector<1x8x36xf32>
      tpu.vector_store %arg9[%c0_35, %c0_36, %c0_37], %59 {strides = array<i32>} : memref<1x8x36xf32, #tpu.memory_space<vmem>>, vector<1x8x36xf32>,
    } else {
    }
    return
  }
  func.func @transform_0(%arg0: i32, %arg1: i32) -> (i32, i32, i32) {
    %c0_i32 = arith.constant 0 : i32
    %c0_i32_0 = arith.constant 0 : i32
    return %arg0, %c0_i32, %arg1 : i32, i32, i32
  }
  func.func @transform_1(%arg0: i32, %arg1: i32) -> (i32, i32) {
    %c0_i32 = arith.constant 0 : i32
    %c0_i32_0 = arith.constant 0 : i32
    %c0_i32_1 = arith.constant 0 : i32
    return %c0_i32, %c0_i32_0 : i32, i32
  }
  func.func @transform_2(%arg0: i32, %arg1: i32) -> (i32, i32, i32) {
    %c0_i32 = arith.constant 0 : i32
    %c0_i32_0 = arith.constant 0 : i32
    %c0_i32_1 = arith.constant 0 : i32
    %c0_i32_2 = arith.constant 0 : i32
    return %c0_i32, %c0_i32_0, %c0_i32_1 : i32, i32, i32
  }
  func.func @transform_3(%arg0: i32, %arg1: i32) -> (i32, i32) {
    %c0_i32 = arith.constant 0 : i32
    %c0_i32_0 = arith.constant 0 : i32
    %c0_i32_1 = arith.constant 0 : i32
    return %c0_i32, %c0_i32_0 : i32, i32
  }
  func.func @transform_4(%arg0: i32, %arg1: i32) -> (i32, i32, i32) {
    %c0_i32 = arith.constant 0 : i32
    %c0_i32_0 = arith.constant 0 : i32
    %c0_i32_1 = arith.constant 0 : i32
    return %arg0, %c0_i32, %c0_i32_0 : i32, i32, i32
  }
  func.func @transform_5(%arg0: i32, %arg1: i32) -> (i32, i32, i32) {
    %c0_i32 = arith.constant 0 : i32
    %c0_i32_0 = arith.constant 0 : i32
    %c0_i32_1 = arith.constant 0 : i32
    return %arg0, %c0_i32, %c0_i32_0 : i32, i32, i32
  }
  func.func @transform_6(%arg0: i32, %arg1: i32) -> (i32, i32, i32) {
    %c0_i32 = arith.constant 0 : i32
    %c0_i32_0 = arith.constant 0 : i32
    %c0_i32_1 = arith.constant 0 : i32
    return %arg0, %c0_i32, %c0_i32_0 : i32, i32, i32
  }
  func.func @transform_7(%arg0: i32, %arg1: i32) -> (i32, i32, i32) {
    %c0_i32 = arith.constant 0 : i32
    %c0_i32_0 = arith.constant 0 : i32
    %c0_i32_1 = arith.constant 0 : i32
    return %arg0, %c0_i32, %c0_i32_0 : i32, i32, i32
  }
}

</mosaic_0001>

<bundles_post_ra>
// kernel: tpu_custom_call.1
= control target key start
LH: loop header
LB: loop body
LE: loop exit
PB: predicated region body
PF: predicated region fallthrough
CT: control target
= control target key end

     0   :  { %s1781_s0 = inlined_call_operand.hbm [shape: f32[2,8,256], index: 0, kind: input, shape index: {}]   ;;  %s1782_s1 = inlined_call_operand.hbm [shape: bf16[256,128], index: 1, kind: input, shape index: {}]   ;;  %s1783_s2 = inlined_call_operand.hbm [shape: bf16[4,8,8], index: 2, kind: input, shape index: {}]   ;;  %s1784_s3 = inlined_call_operand.vmem [shape: f32[1,128], index: 3, kind: input, shape index: {}]   ;;  %s1785_s4 = inlined_call_operand.vmem [shape: f32[2,8,1], index: 4, kind: output, shape index: {0}]   ;;  %s1786_s5 = inlined_call_operand.vmem [shape: f32[2,8,4], index: 5, kind: output, shape index: {1}]   ;;  %s1787_s6 = inlined_call_operand.hbm [shape: f32[2,8,9], index: 6, kind: output, shape index: {2}]   ;;  %s1788_s7 = inlined_call_operand.hbm [shape: f32[2,8,36], index: 7, kind: output, shape index: {3}]  }
   0x1   :  { %1800 = sst [smem:[#allocation21_spill]] %s1782_s1 }
   0x2   :  { %1801 = sst [smem:[#allocation22_spill]] %s1783_s2 }
   0x3   :  { %1802 = sst [smem:[#allocation23_spill]] %s1784_s3 }
   0x4   :  { %1803 = sst [smem:[#allocation24_spill]] %s1785_s4 }
   0x5   :  { %1804 = sst [smem:[#allocation25_spill]] %s1786_s5 }
   0x6   :  { %1805 = sst [smem:[#allocation26_spill]] %s1787_s6 }
   0x7   :  { %1806 = sst [smem:[#allocation27_spill]] %s1788_s7 }
   0x8   :  { %13 = vsyncpa [#allocation4], 0 }
   0x9   :  { %15 = vsyncpa [#allocation4 + $0x1], 0 }
   0xa   :  { %16 = vsyncpa [#allocation7], 0 }
   0xb   :  { %17 = vsyncpa [#allocation5], 0 }
   0xc   :  { %19 = vsyncpa [#allocation5 + $0x1], 0 }
   0xd   :  { %20 = vsyncpa [#allocation11], 0 }
   0xe   :  { %22 = vsyncpa [#allocation11 + $0x1], 0  ;;  %s1492_s24 = smov 0   ;;  %s1494_s25 = smov 0  }
   0xf   :  { %s1496_s26 = smov 0   ;;  %s1498_s27 = smov 0  }
  0x10   :  { %s1500_s28 = smov 0   ;;  %s1502_s29 = smov 0  }
  0x11   :  { %s1504_s30 = smov 0   ;;  %s1506_s8 = smov 0  }
  0x12   :  { %s1508_s9 = smov 0   ;;  %s1510_s10 = smov 0  }
  0x13   :  { %s1512_s11 = smov 0  }
  0x14 LB: > { %1807 = sst [smem:[#allocation16_spill]] %s1395_s24  ;;  %s954_s12 = sadd.s32 4294967295, %s1435_s11   ;;  %s1435_s11 = sphi %s1512_s11, %s28_s11   ;;  %s1431_s10 = sphi %s1510_s10, %s1845_s10   ;;  %s1427_s9 = sphi %s1508_s9, %s1844_s9   ;;  %s1423_s8 = sphi %s1506_s8, %s1843_s8   ;;  %s1419_s30 = sphi %s1504_s30, %s1842_s30   ;;  %s1415_s29 = sphi %s1502_s29, %s1841_s29   ;;  %s1411_s28 = sphi %s1500_s28, %s1840_s28   ;;  %s1407_s27 = sphi %s1498_s27, %s1839_s27   ;;  %s1403_s26 = sphi %s1496_s26, %s1838_s26   ;;  %s1399_s25 = sphi %s1494_s25, %s1837_s25   ;;  %s1395_s24 = sphi %s1492_s24, %s1836_s24  }
  0x15   : > { %1808 = sst [smem:[#allocation17_spill]] %s1419_s30  ;;  %s955_s13 = sadd.s32 4294967294, %s1435_s11  }
  0x16   : > { %p62_p0 = scmp.ne.s32.totalorder %s1411_s28, %s1407_s27  ;;  %p1548_p1 = scmp.eq.s32.totalorder %s954_s12, 0 }
  0x17   : > { %p200_p2 = scmp.ne.s32.totalorder %s1403_s26, %s1399_s25  ;;  %p201_p3 = scmp.eq.s32.totalorder %s954_s12, 3 }
  0x18   : > { %s1809_s14 = scalar_select %p1548_p1, 1, 0 }
  0x19   : > { %p1556_p4 = por %p1548_p1, %p62_p0  ;;  %p206_p5 = scmp.ne.s32.totalorder %s1399_s25, %s1395_s24 }
  0x1a   : > { %p1562_p6 = por %p201_p3, %p200_p2  ;;  %p207_p7 = scmp.eq.s32.totalorder %s955_s13, 3 }
  0x1b   : > { %p956_p8 = scmp.ge.s32.totalorder %s1435_s11, 1  ;;  %p240_p9 = scmp.lt.s32.totalorder %s1435_s11, 5 }
  0x1c   : > { %s1811_s16 = scalar_select %p1562_p6, 1, 0 }
  0x1d   : > { %p1568_p10 = por %p207_p7, %p206_p5  ;;  %p1572_p11 = pnand %p956_p8, %p240_p9 }
  0x1e   : > { %1812 = sst [smem:[#allocation18_spill]] %s1811_s16  ;;  %s1437_s19 = smov [#allocation6]  }
  0x1f   : > { %s1813_s17 = scalar_select %p1568_p10, 1, 0 }
  0x20   : > { %s252_s20 = sshll.u32 %s1437_s19, 4  ;;  %p1069_p12 = pneg %p1572_p11  ;;  %s253_s20 = int_to_ptr.vmem [resolvable:$true] %s252_s20 }
  0x21   : > { %1814 = sst [smem:[#allocation19_spill]] %s1813_s17  ;;  %s1438_s22 = smov [#allocation8]  }
  0x22   : > { %p1580_p13 = pnand %p1069_p12, %p1548_p1  ;;  %s265_s23 = sshll.u32 %s1438_s22, 4  ;;  %s266_s23 = int_to_ptr.vmem [resolvable:$true] %s265_s23 }
  0x23   : > { %s1212_s27 = scalar_lea.vmem %s253_s20, 2048  ;;  %p1220_p7 = scmp.lt.s32.totalorder %s253_s20, %s253_s20 }
  0x24   : > { %p1203_p0 = pneg %p1580_p13  ;;  %p1213_p2 = scmp.ne.s32.totalorder %s253_s20, %s1212_s27 }
  0x25   : > { %p1221_p8 = scmp.lt.s32.totalorder %s1212_s27, %s1212_s27 }
  0x26   : > { %p1215_p3 = pnand %p1213_p2, %p1203_p0 }
  0x27   : > { %p1222_p9 = por %p1221_p8, %p1220_p7 }
  0x28   : > { %p1216_p5 = pneg %p1215_p3 }
  0x2a   : > { %p1223_p12 = pnand %p1222_p9, %p1216_p5 }
  0x2c   : > { %1226 = shalt.err (!%p1223_p12)
}
  0x2d   : > { %s1439_s12 = smov 64   ;;  %s1440_s13 = smov 4  }
  0x2e   : > { %s1817_s1 = sld [smem:[#allocation21_spill]]  ;;  %s1238_s17 = scalar_lea.vmem %s266_s23, 256 }
  0x2f   : > { %p1239_p10 = scmp.ne.s32.totalorder %s266_s23, %s1238_s17  ;;  %p1246_p6 = scmp.lt.s32.totalorder %s266_s23, %s266_s23 }
  0x30   : > { %p1247_p1 = scmp.lt.s32.totalorder %s1238_s17, %s1238_s17 }
  0x31   : > { %p1241_p2 = pnand %p1239_p10, %p1203_p0 }
  0x32   : > { %p1248_p7 = por %p1247_p1, %p1246_p6 }
  0x33   : > { %p1242_p3 = pneg %p1241_p2 }
  0x34   : > { %1072 = dma.hbm_to_vmem [thread:$0]  (!%p1580_p13), %s1817_s1, 2048, %s253_s20, [#allocation7], %s1439_s12, %s1439_s12, %s1440_s13  }
  0x35   : > { %p1249_p5 = pnand %p1248_p7, %p1242_p3 }
  0x37   : > { %1252 = shalt.err (!%p1249_p5)
}
  0x38   : > { %s1818_s2 = sld [smem:[#allocation22_spill]]  ;;  %s37_s17 = sadd.s32 1, %s1427_s9 }
  0x39   : > { %p38_p1 = scmp.ge.s32.totalorder %s37_s17, 2  ;;  %s40_s20 = sadd.s32 1, %s1431_s10 }
  0x3a   : > { %p56_p6 = scmp.ne.s32.totalorder %s1415_s29, %s1411_s28  ;;  %s49_s24 = sadd.s32 1, %s1415_s29 }
  0x3b   : > { %s1847_s17 = smov (%p38_p1, %s37_s17), 0  ;;  %s1849_s20 = smov (!%p38_p1, %s40_s20), %s1431_s10 }
  0x3c   : > { %1819 = sst [smem:[#allocation20_spill]] %s1847_s17  ;;  %p57_p10 = scmp.eq.s32.totalorder %s1435_s11, 0 }
  0x3d   : > { %p42_p0 = scmp.ge.s32.totalorder %s1849_s20, 2  ;;  %s45_s21 = ssub.s32 %s1427_s9, %s1847_s17 }
  0x3e   : > { %1075 = dma.hbm_to_vmem [thread:$0]  (!%p1580_p13), %s1818_s2, 256, %s266_s23, [#allocation7], %s1439_s12, %s1439_s12, %s1440_s13  }
  0x3f   : > { %p1613_p8 = por %p57_p10, %p56_p6  ;;  %s190_s23 = sadd.s32 1, %s1403_s26 }
  0x40   : > { %s1851_s20 = smov (%p42_p0, %s1849_s20), 0  ;;  %p1089_p13 = scmp.lt.s32.totalorder %s1435_s11, 4 }
  0x41   : > { %s282_s12 = sand.u32 1, %s1415_s29   ;;  %s44_s13 = ssub.s32 %s1431_s10, %s1851_s20 }
  0x42   : > { %s961_s22 = sshll.u32 %s1431_s10, 1  ;;  %s46_s27 = sor.u32 %s45_s21, %s44_s13 }
  0x43   : > { %p188_p9 = scmp.eq.s32.totalorder %s44_s13, 0  ;;  %p47_p12 = scmp.eq.s32.totalorder %s46_s27, 0 }
  0x44   : > { %s960_s1 = sshll.u32 %s282_s12, 3  ;;  %s291_s7 = sadd.s32 %s1427_s9, %s961_s22 }
  0x45   : > { %s1626_s2 = scalar_select %p188_p9, %s1403_s26, %s190_s23  }
  0x46   : > { %s1629_s17 = scalar_select %p47_p12, %s1415_s29, %s49_s24  }
  0x47   : > { %s962_s6 = sshll.u32 %s291_s7, 7  ;;  %s286_s16 = scalar_lea.vmem [#allocation3], %s960_s1 }
  0x48   : > { %s295_s3 = sshll.u32 %s286_s16, 4  ;;  %s293_s4 = scalar_lea.hbm %s1781_s0, %s962_s6  ;;  %s296_s3 = int_to_ptr.vmem [resolvable:$true] %s295_s3 }
  0x49   : > { %p1639_p2 = pnand %p1089_p13, %p1613_p8  ;;  %s283_s23 = scalar_lea.sflag [#allocation4], %s282_s12 }
  0x4a   : > { %s1266_s24 = scalar_lea.vmem %s296_s3, 128  ;;  %s1441_s1 = smov [#allocation3]  }
  0x4b   : > { %p1255_p3 = pneg %p1639_p2  ;;  %p1267_p7 = scmp.ne.s32.totalorder %s296_s3, %s1266_s24 }
  0x4c   : > { %s1271_s7 = sshll.u32 %s1441_s1, 4  ;;  %s1272_s7 = int_to_ptr.vmem [resolvable:$false] %s1271_s7 }
  0x4d   : > { %p1269_p5 = pnand %p1267_p7, %p1255_p3  ;;  %s1273_s5 = scalar_lea.vmem %s1272_s7, 256 }
  0x4e   : > { %p1274_p6 = scmp.lt.s32.totalorder %s296_s3, %s1272_s7  ;;  %p1275_p10 = scmp.lt.s32.totalorder %s1273_s5, %s1266_s24 }
  0x4f   : > { %p1270_p1 = pneg %p1269_p5 }
  0x50   : > { %p1276_p0 = por %p1275_p10, %p1274_p6 }
  0x52   : > { %p1277_p9 = pnand %p1276_p0, %p1270_p1 }
  0x54   : > { %1280 = shalt.err (!%p1277_p9)
}
  0x55   : > { %1079 = dma.hbm_to_vmem [thread:$0]  (!%p1639_p2), %s293_s4, 128, %s296_s3, %s283_s23  }
  0x56   : > { %304 = sbr.rel (%p1572_p11) target bundleno = 737 (0x2e1), region = 36  ;;  %s306_s6 = sand.u32 (!%p1572_p11), 1, %s1411_s28  }
  0x57   : > { %s1650_s30 = sshll.u32 (!%p1572_p11), %s306_s6, 3  ;;  %s307_s16 = scalar_lea.sflag (!%p1572_p11), [#allocation4], %s306_s6 }
  0x58   : > { %s310_s19 = scalar_lea.vmem (!%p1572_p11), [#allocation3], %s1650_s30 }
  0x5b   : > { %1378 = dma.done.wait (%p1556_p4), %s307_s16, 128  }
  0x5c   : > { %1380 = vsyncadd (%p1556_p4), %s307_s16, 4294967168  ;;  %p1822_p8 = scmp.ne.s32.totalorder %s1809_s14, 0 }
  0x5e   : > { %1382 = dma.done.wait (%p1822_p8), [#allocation7], 2304  }
  0x5f   : > { %1384 = vsyncadd (%p1822_p8), [#allocation7], 4294964992  ;;  %s1662_s3 = sand.u32 1, %s1399_s25   ;;  %p362_p11 = scmp.lt.s32.totalorder %s1423_s8, 1 }
  0x60   : > { %s967_s4 = sshll.u32 %s1662_s3, 3  ;;  %s1823_s15 = sld [smem:[#allocation24_spill]] }
  0x61   : > { %s363_s18 = scalar_select %p362_p11, %s1423_s8, 1 }
  0x62   : > { %s1824_s24 = sld [smem:[#allocation25_spill]]  ;;  %s1677_s1 = scalar_lea.vmem [#allocation9], %s967_s4 }
  0x63   : > { %s969_s12 = sshll.u32 %s363_s18, 3  ;;  %s1679_s7 = scalar_lea.vmem [#allocation10], %s967_s4 }
  0x64   : > { %s1825_s5 = sld [smem:[#allocation17_spill]] }
  0x66   : > { %s1670_s27 = scalar_lea.vmem %s1823_s15, %s969_s12 }
  0x68   : > { %s1675_s14 = scalar_lea.vmem %s1824_s24, %s969_s12 }
  0x6a   : > { %p971_p4 = scmp.ne.s32.totalorder %s1825_s5, 0 }
  0x6c   : > { %374 = sbr.rel (%p971_p4) target bundleno = 115 (0x73), region = 52 }
  0x71   : > { %v1442_v0 = vmov 0.0  }
  0x72   : > { %375 = vst [vmem:[#allocation2] sm:$0xff] %v1442_v0 }
  0x73 PF: > { %s1826_s6 = sld [smem:[#allocation17_spill]]  ;;  %v1443_v1 = vmov 0.0   ;;  %vm1444_vm0 = vmmov 0   ;;  %v378_v10 = vld [vmem:[%s310_s19] sm:$0xff] }
  0x74   : > { %1011 = vmatprep.subr.bf16.mxu0 %v1443_v1  ;;  %1027 = vmatprep.mubr.msk.bf16.mxu0 %vm1444_vm0, %v1443_v1  ;;  %v379_v11 = vpack.c.bf16 %v378_v10, %v378_v10 }
  0x79   : > { %s972_s16 = sshll.u32 %s1826_s6, 7  ;;  %v377_v12 = vld [vmem:[#allocation2] sm:$0xff]  ;;  %p982_p13 = scmp.ne.s32.totalorder %s1826_s6, 1 }
  0x7a   : > { %s380_s18 = sshra.s32 %s972_s16, 3  ;;  %s1447_s30 = smov (!%p982_p13), 127  }
  0x7b   : > { %s973_s13 = sshll.u32 %s380_s18, 2  ;;  %s1448_s19 = smov (!%p982_p13), 114  }
  0x7c   : > { %s383_s12 = scalar_lea.vmem [#allocation6], %s973_s13  ;;  %s1827_s15 = sld [smem:[#allocation23_spill]] (!%p982_p13) }
  0x7d   : > { %v1193_v2 = vld [vmem:[%s383_s12 + $0x38] sm:$0xff]   ;;  %v1194_v3 = vld [vmem:[%s383_s12 + $0x30] sm:$0xff]   ;;  %v1195_v4 = vld [vmem:[%s383_s12 + $0x28] sm:$0xff]   ;;  %s1449_s21 = smov (!%p982_p13), 123  }
  0x7e   : > { %1012 = vmatpush3.bf16.msra.mxu0 %v1193_v2  ;;  %v1196_v5 = vld [vmem:[%s383_s12 + $0x20] sm:$0xff]   ;;  %v1197_v6 = vld [vmem:[%s383_s12 + $0x18] sm:$0xff]   ;;  %v1198_v7 = vld [vmem:[%s383_s12 + $0x10] sm:$0xff]  }
  0x7f   : > { %1013 = vmatprep.subr.bf16.mxu0 %v1443_v1  ;;  %v1199_v8 = vld [vmem:[%s383_s12 + $0x8] sm:$0xff]   ;;  %v1200_v9 = vld [vmem:[%s383_s12] sm:$0xff]  }
  0x82   : > { %1014 = vmatpush3.bf16.msra.mxu0 %v1194_v3 }
  0x83   : > { %1015 = vmatprep.subr.bf16.mxu0 %v1443_v1 }
  0x86   : > { %1016 = vmatpush3.bf16.msra.mxu0 %v1195_v4 }
  0x87   : > { %1017 = vmatprep.subr.bf16.mxu0 %v1443_v1 }
  0x8a   : > { %1018 = vmatpush3.bf16.msra.mxu0 %v1196_v5 }
  0x8b   : > { %1019 = vmatprep.subr.bf16.mxu0 %v1443_v1 }
  0x8e   : > { %1020 = vmatpush3.bf16.msra.mxu0 %v1197_v6 }
  0x8f   : > { %1021 = vmatprep.subr.bf16.mxu0 %v1443_v1 }
  0x92   : > { %1022 = vmatpush3.bf16.msra.mxu0 %v1198_v7 }
  0x93   : > { %1023 = vmatprep.subr.bf16.mxu0 %v1443_v1 }
  0x96   : > { %1024 = vmatpush3.bf16.msra.mxu0 %v1199_v8 }
  0x97   : > { %1025 = vmatprep.subr.bf16.mxu0 %v1443_v1 }
  0x9a   : > { %1026 = vmatpush3.bf16.msra.mxu0 %v1200_v9 }
  0x9d   : > { %1028 = vmatmul.mubr.bf16.vlgmr.msra.gmra.mxu0 %v379_v11 }
 0x15d   : > { %v482_v13 = vpop.f32.mrf.mxu0 }
 0x15e   : > { %v488_v14 = vadd.f32 %v482_v13, %v377_v12 }
 0x15f   : > { %v1029_v15 = vpop.f32.mrf.mxu0  ;;  %493 = sbr.rel (%p982_p13) target bundleno = 688 (0x2b0), region = 56 }
 0x160   : > { %489 = vst [vmem:[#allocation2] sm:$0xff] %v488_v14 }
 0x161   : > { %v485_v16 = vpop.f32.mrf.mxu0 }
 0x163   : > { %v1030_v17 = vpop.f32.mrf.mxu0 }
 0x164   : > { %vm502_vm1 = vcmask 1043456   ;;  %v1445_v20 = vmov 0.0   ;;  %vm1446_vm2 = vmmov 0   ;;  %v497_v22 = vld [vmem:[#allocation8] sm:$0xf]  ;;  %vm498_vm3 = vcmask 64512  }
 0x165   : > { %1031 = vmatprep.subr.bf16.mxu0 %v1445_v20  ;;  %1033 = vmatprep.mubr.msk.bf16.mxu0 %vm1446_vm2, %v1445_v20  ;;  %v984_v23 = vld [vmem:[%s1827_s15] ss:$0 sm:$0xff]  ;;  %v556_v27 = vld [vmem:[#allocation8 + $0x4] sm:$0xf]  ;;  %v669_v32 = vld [vmem:[#allocation8 + $0xc] sm:$0xf] }
 0x166   : > { %1037 = vmatprep.subr.bf16.mxu1 %v1445_v20  ;;  %1039 = vmatprep.mubr.msk.bf16.mxu1 %vm1446_vm2, %v1445_v20  ;;  %v613_v31 = vld [vmem:[#allocation8 + $0x8] sm:$0xf]  ;;  %vm553_vm4 = vcmask 7168   ;;  %vm610_vm5 = vcmask 31744   ;;  %vm666_vm6 = vcmask 72704   ;;  %vm722_vm7 = vcmask 293888  }
 0x167   : > { %v494_v18 = vld [vmem:[#allocation2] sm:$0xff] }
 0x168   : > { %v495_v19 = vpack.c.bf16 %v494_v18, %v494_v18 }
 0x16a   : > { %558 = vrot.lane.b32.xlu0 %v495_v19, %s1447_s30  ;;  %670 = vrot.lane.b32.xlu1 %v495_v19, %s1448_s19  ;;  %v504_v21 = vsel %vm502_vm1, %v495_v19, 0 }
 0x16b   : > { %1032 = vmatpush3.bf16.msra.mxu0 %v504_v21 }
 0x16c   : > { %1043 = vmatprep.subr.bf16.mxu0 %v1445_v20 }
 0x16e   : > { %614 = vrot.lane.b32.xlu0 %v495_v19, %s1449_s21  ;;  %1034 = vmatmul.mubr.msk.bf16.vlgmr.msra.gmra.mxu0 %vm498_vm3, %v497_v22 }
 0x16f   : > { %1045 = vmatprep.mubr.msk.bf16.mxu0 %vm1446_vm2, %v1445_v20  ;;  %606 = vrot.lane.b32.xlu1 %v984_v23, %s1447_s30 }
 0x172   : > { %662 = vrot.lane.b32.xlu0 %v984_v23, %s1449_s21 }
 0x173   : > { %718 = vrot.lane.b32.xlu1 %v984_v23, %s1448_s19 }
 0x1dc   : > { %v559_v24 = vpop.permute.xlu0 %558  ;;  %v671_v25 = vpop.permute.xlu1 %670 }
 0x1dd   : > { %v564_v26 = vsel %vm502_vm1, %v559_v24, 0  ;;  %v676_v28 = vsel %vm502_vm1, %v671_v25, 0 }
 0x1de   : > { %1038 = vmatpush3.bf16.msra.mxu1 %v564_v26 }
 0x1df   : > { %1049 = vmatprep.subr.bf16.mxu1 %v1445_v20 }
 0x1e0   : > { %v615_v29 = vpop.permute.xlu0 %614 }
 0x1e1   : > { %v620_v30 = vsel %vm502_vm1, %v615_v29, 0  ;;  %1040 = vmatmul.mubr.msk.bf16.vlgmr.msra.gmra.mxu1 %vm498_vm3, %v556_v27  ;;  %v607_v38 = vpop.permute.xlu1 %606 }
 0x1e2   : > { %1044 = vmatpush3.bf16.msra.mxu0 %v620_v30  ;;  %1050 = vmatpush3.bf16.msra.mxu1 %v676_v28 }
 0x1e3   : > { %1051 = vmatprep.mubr.msk.bf16.mxu1 %vm1446_vm2, %v1445_v20 }
 0x1e4   : > { %v663_v42 = vpop.permute.xlu0 %662 }
 0x1e5   : > { %1046 = vmatmul.mubr.msk.bf16.vlgmr.msra.gmra.mxu0 %vm498_vm3, %v613_v31  ;;  %v719_v45 = vpop.permute.xlu1 %718 }
 0x1e9   : > { %1052 = vmatmul.mubr.msk.bf16.vlgmr.msra.gmra.mxu1 %vm498_vm3, %v669_v32 }
 0x22e   : > { %v540_v33 = vpop.f32.mrf.mxu0 }
 0x22f   : > { %v552_v34 = vmul.f32 %v984_v23, %v540_v33 }
 0x230   : > { %v1035_v35 = vpop.f32.mrf.mxu0 }
 0x231   : > { %554 = vst.msk [vmem:[%s1670_s27] sm:$0xff] %vm553_vm4, %v552_v34 }
 0x232   : > { %v543_v36 = vpop.f32.mrf.mxu0 }
 0x234   : > { %v1036_v37 = vpop.f32.mrf.mxu0 }
 0x2a1   : > { %v600_v39 = vpop.f32.mrf.mxu1 }
 0x2a2   : > { %v609_v40 = vmul.f32 %v607_v38, %v600_v39 }
 0x2a3   : > { %v1041_v41 = vpop.f32.mrf.mxu1 }
 0x2a4   : > { %611 = vst.msk [vmem:[%s1675_s14] sm:$0xff] %vm610_vm5, %v609_v40 }
 0x2a5   : > { %v603_v43 = vpop.f32.mrf.mxu1  ;;  %v656_v44 = vpop.f32.mrf.mxu0 }
 0x2a6   : > { %v665_v46 = vmul.f32 %v663_v42, %v656_v44 }
 0x2a7   : > { %v1042_v47 = vpop.f32.mrf.mxu1  ;;  %v1047_v48 = vpop.f32.mrf.mxu0 }
 0x2a8   : > { %667 = vst.msk [vmem:[%s1677_s1] sm:$0xff] %vm666_vm6, %v665_v46 }
 0x2a9   : > { %v659_v49 = vpop.f32.mrf.mxu0  ;;  %v712_v50 = vpop.f32.mrf.mxu1 }
 0x2aa   : > { %v721_v51 = vmul.f32 %v719_v45, %v712_v50 }
 0x2ab   : > { %v1048_v52 = vpop.f32.mrf.mxu0  ;;  %v1053_v53 = vpop.f32.mrf.mxu1 }
 0x2ac   : > { %723 = vst.msk [vmem:[%s1679_s7] sm:$0xff] %vm722_vm7, %v721_v51 }
 0x2ad   : > { %v715_v54 = vpop.f32.mrf.mxu1 }
 0x2af   : > { %v1054_v55 = vpop.f32.mrf.mxu1 }
 0x2b0 PF: > { %s1828_s27 = sld [smem:[#allocation18_spill]]  ;;  %s990_s23 = sshll.u32 %s1423_s8, 7 }
 0x2b1   : > { %s1829_s5 = sld [smem:[#allocation26_spill]]  ;;  %s757_s16 = sshll.u32 %s1677_s1, 4  ;;  %s758_s16 = int_to_ptr.vmem [resolvable:$true] %s757_s16 }
 0x2b2   : > { %s733_s18 = scalar_lea.sflag [#allocation5], %s1662_s3  ;;  %s1281_s13 = scalar_lea.vmem %s758_s16, 128 }
 0x2b3   : > { %p1282_p12 = scmp.ne.s32.totalorder %s758_s16, %s1281_s13  ;;  %s1450_s12 = smov [#allocation9]  }
 0x2b4   : > { %s1285_s30 = sshll.u32 %s1450_s12, 4  ;;  %s1286_s30 = int_to_ptr.vmem [resolvable:$false] %s1285_s30 }
 0x2b5   : > { %s1287_s19 = scalar_lea.vmem %s1286_s30, 256  ;;  %p1288_p5 = scmp.lt.s32.totalorder %s758_s16, %s1286_s30 }
 0x2b6   : > { %p1830_p2 = scmp.ne.s32.totalorder %s1828_s27, 0  ;;  %p1289_p1 = scmp.lt.s32.totalorder %s1287_s19, %s1281_s13 }
 0x2b7   : > { %s755_s6 = scalar_lea.hbm %s1829_s5, %s990_s23 }
 0x2b8   : > { %p1283_p3 = pnand %p1282_p12, %p1830_p2  ;;  %p1290_p6 = por %p1289_p1, %p1288_p5 }
 0x2ba   : > { %p1284_p7 = pneg %p1283_p3 }
 0x2bc   : > { %p1291_p10 = pnand %p1290_p6, %p1284_p7 }
 0x2be   : > { %1294 = shalt.err (!%p1291_p10)
}
 0x2bf   : > { %s1295_s4 = scalar_lea.hbm %s755_s6, 128  ;;  %s1299_s15 = scalar_lea.hbm %s1829_s5, 256 }
 0x2c0   : > { %p1296_p0 = scmp.ne.s32.totalorder %s755_s6, %s1295_s4  ;;  %p1300_p11 = scmp.lt.s32.totalorder %s755_s6, %s1829_s5 }
 0x2c1   : > { %p1301_p4 = scmp.lt.s32.totalorder %s1299_s15, %s1295_s4 }
 0x2c2   : > { %p1297_p9 = pnand %p1296_p0, %p1830_p2 }
 0x2c3   : > { %p1302_p13 = por %p1301_p4, %p1300_p11 }
 0x2c4   : > { %p1298_p8 = pneg %p1297_p9 }
 0x2c6   : > { %p1303_p12 = pnand %p1302_p13, %p1298_p8 }
 0x2c8   : > { %1306 = shalt.err (!%p1303_p12)
}
 0x2c9   : > { %1065 = dma.vmem_to_hbm [thread:$0]  (%p1830_p2), %s758_s16, 128, %s755_s6, %s733_s18  }
 0x2ca   : > { %s1831_s12 = sld [smem:[#allocation27_spill]]  ;;  %s770_s19 = sshll.u32 %s1679_s7, 4  ;;  %s771_s19 = int_to_ptr.vmem [resolvable:$true] %s770_s19 }
 0x2cb   : > { %s738_s1 = scalar_lea.sflag [#allocation11], %s1662_s3  ;;  %s1307_s22 = scalar_lea.vmem %s771_s19, 128 }
 0x2cc   : > { %p1308_p3 = scmp.ne.s32.totalorder %s771_s19, %s1307_s22  ;;  %s1451_s4 = smov [#allocation10]  }
 0x2cd   : > { %s1311_s15 = sshll.u32 %s1451_s4, 4  ;;  %s1312_s15 = int_to_ptr.vmem [resolvable:$false] %s1311_s15 }
 0x2ce   : > { %p1309_p7 = pnand %p1308_p3, %p1830_p2  ;;  %s1313_s21 = scalar_lea.vmem %s1312_s15, 256 }
 0x2cf   : > { %p1314_p1 = scmp.lt.s32.totalorder %s771_s19, %s1312_s15  ;;  %p1315_p6 = scmp.lt.s32.totalorder %s1313_s21, %s1307_s22 }
 0x2d0   : > { %s768_s30 = scalar_lea.hbm %s1831_s12, %s990_s23  ;;  %p1310_p5 = pneg %p1309_p7 }
 0x2d1   : > { %p1316_p10 = por %p1315_p6, %p1314_p1 }
 0x2d3   : > { %p1317_p0 = pnand %p1316_p10, %p1310_p5 }
 0x2d5   : > { %1320 = shalt.err (!%p1317_p0)
}
 0x2d6   : > { %s1321_s8 = scalar_lea.hbm %s768_s30, 128  ;;  %s1325_s23 = scalar_lea.hbm %s1831_s12, 256 }
 0x2d7   : > { %p1322_p9 = scmp.ne.s32.totalorder %s768_s30, %s1321_s8  ;;  %p1326_p4 = scmp.lt.s32.totalorder %s768_s30, %s1831_s12 }
 0x2d8   : > { %p1327_p13 = scmp.lt.s32.totalorder %s1325_s23, %s1321_s8 }
 0x2d9   : > { %p1323_p8 = pnand %p1322_p9, %p1830_p2 }
 0x2da   : > { %p1328_p12 = por %p1327_p13, %p1326_p4 }
 0x2db   : > { %p1324_p11 = pneg %p1323_p8 }
 0x2dd   : > { %p1329_p3 = pnand %p1328_p12, %p1324_p11 }
 0x2df   : > { %1332 = shalt.err (!%p1329_p3)
}
 0x2e0   : > { %1066 = dma.vmem_to_hbm [thread:$0]  (%p1830_p2), %s771_s19, 128, %s768_s30, %s738_s1  }
 0x2e1 PF: > { %s1832_s18 = sld [smem:[#allocation16_spill]]  ;;  %p1092_p7 = scmp.ge.s32.totalorder %s1435_s11, 2 }
 0x2e2   : > { %s1833_s24 = sld [smem:[#allocation19_spill]] }
 0x2e7   : > { %s796_s14 = sand.u32 1, %s1832_s18  }
 0x2e8   : > { %p1834_p5 = scmp.ne.s32.totalorder %s1833_s24, 0  ;;  %s797_s13 = scalar_lea.sflag [#allocation5], %s796_s14 }
 0x2ea   : > { %p1081_p1 = pnand %p1092_p7, %p1834_p5 }
 0x2ec   : > { %p1082_p6 = pneg %p1081_p1 }
 0x2ee   : > { %1386 = dma.done.wait (%p1082_p6), %s797_s13, 128  }
 0x2ef   : > { %1388 = vsyncadd (%p1082_p6), %s797_s13, 4294967168  ;;  %s806_s22 = scalar_lea.sflag [#allocation11], %s796_s14 }
 0x2f0   : > { %1390 = dma.done.wait (%p1082_p6), %s806_s22, 128  }
 0x2f1   : > { %1392 = vsyncadd (%p1082_p6), %s806_s22, 4294967168  ;;  %s28_s11 = sadd.s32 1, %s1435_s11   ;;  %s1835_s19 = sld [smem:[#allocation20_spill]] }
 0x2f2   : > { %p25_p10 = scmp.ge.s32.totalorder %s28_s11, 6   ;;  %s1836_s24 = smov %s1399_s25 }
 0x2f3   : > { %s1837_s25 = smov %s1403_s26  ;;  %s1838_s26 = smov %s1626_s2 }
 0x2f4   : > { %s1839_s27 = smov %s1411_s28  ;;  %s1840_s28 = smov %s1415_s29 }
 0x2f5   : > { %s1841_s29 = smov %s1629_s17  ;;  %s1842_s30 = smov %s1427_s9 }
 0x2f6   : > { %s1843_s8 = smov %s1431_s10  ;;  %s1845_s10 = smov %s1851_s20 }
 0x2f7   : > { %s1844_s9 = smov %s1835_s19  ;;  %27 = sbr.rel (!%p25_p10) target bundleno = 20 (0x14), region = 142 }
 0x2fc   :  { %811 = vsyncpa [#allocation4], 1 }
 0x2fd   :  { %813 = vsyncpa [#allocation4 + $0x1], 1 }
 0x2fe   :  { %814 = vsyncpa [#allocation7], 1 }
 0x2ff   :  { %815 = vsyncpa [#allocation5], 1 }
 0x300   :  { %817 = vsyncpa [#allocation5 + $0x1], 1 }
 0x301   :  { %818 = vsyncpa [#allocation11], 1 }
 0x302   :  { %820 = vsyncpa [#allocation11 + $0x1], 1 }

</bundles_post_ra>
